<compile_context>
chip_gen: v6e
topology: v6e:2x2x1
jax: 0.10.0
libtpu: 0.0.40
codegen_flags: <defaults>
</compile_context>

<pallas_src>
import jax
import jax.numpy as jnp
from jax.experimental import pallas as pl
from jax.experimental.pallas import tpu as pltpu

# Registered buffers of the PyTorch module (kept in float32).
_SHIFT = (-0.030, -0.088, -0.188)
_SCALE = (0.458, 0.448, 0.450)

_MAX_BLOCK_BYTES = 4 * 1024 * 1024        # target block size (1-4 MiB sweet spot)
_SINGLE_BLOCK_BYTES = 256 * 1024          # below this, one full-array block
_MIN_PIPELINE_BLOCK_BYTES = 256 * 1024    # don't shrink blocks below this for steps
_MIN_GRID_STEPS = 4                       # >=4 steps: DMA overlap + v7x 2-TC sharing
_MAX_ROW_SPLIT = 64


def _scaling_kernel(x_ref, a_ref, b_ref, o_ref):
    # y = (x - shift) / scale  ==  x * (1/scale) + (-shift/scale)
    x = x_ref[...]          # (rows_s, tile) lane-dense block
    a = a_ref[...]          # (rows_s, 1) f32, broadcasts along lanes
    b = b_ref[...]          # (rows_s, 1) f32
    o_ref[...] = (x * a + b).astype(o_ref.dtype)


def _round_up(x: int, m: int) -> int:
    return (x + m - 1) // m * m


def _pick_row_split(rows: int, lane: int) -> int:
    """Smallest k so sublane dim (rows*k) % 8 == 0 and lane % (128*k) == 0."""
    for k in range(1, _MAX_ROW_SPLIT + 1):
        if (rows * k) % 8 == 0 and lane % (128 * k) == 0:
            return k
    return 1  # fall back: correctness is unaffected, only sublane occupancy


def _pick_tile(lane: int, rows: int, itemsize: int) -> int:
    """Largest multiple-of-128 divisor of `lane` within the byte budget."""
    row_bytes = max(1, rows * itemsize)
    total = lane * row_bytes
    if total <= _SINGLE_BLOCK_BYTES or lane <= 128:
        return lane                                   # single-block fast path
    budget_cols = max(128, _MAX_BLOCK_BYTES // row_bytes)
    target = min(lane, budget_cols)
    # Keep >= _MIN_GRID_STEPS pipeline steps as long as blocks stay big enough.
    steps_cols = lane // _MIN_GRID_STEPS
    if steps_cols * row_bytes >= _MIN_PIPELINE_BLOCK_BYTES:
        target = min(target, steps_cols)
    t = max(128, target - target % 128)
    while t > 128 and lane % t != 0:                  # lane % 128 == 0 -> terminates
        t -= 128
    return t


def scaling_layer(inp: jax.Array) -> jax.Array:
    """Pallas implementation of LPIPS ScalingLayer.forward (NCHW input)."""
    n, c, h, w = inp.shape
    assert c == 3, "ScalingLayer is defined for 3 input channels (RGB)."
    dtype = inp.dtype
    itemsize = jnp.dtype(dtype).itemsize
    hw = h * w
    rows = n * c

    # --- layout plumbing (free/cheap in the wrapper) ---------------------
    hw_pad = max(_round_up(hw, 128), 128)
    x2 = inp.reshape(rows, hw)
    if hw_pad != hw:
        x2 = jnp.pad(x2, ((0, 0), (0, hw_pad - hw)))

    k = _pick_row_split(rows, hw_pad)
    rows_s = rows * k
    lane_s = hw_pad // k
    x2 = x2.reshape(rows_s, lane_s)

    # Fold constants in float32: a = 1/scale, b = -shift/scale (per channel),
    # expanded to one scalar per row of the (rows_s, lane_s) view.
    inv_scale = 1.0 / jnp.asarray(_SCALE, dtype=jnp.float32)        # (3,)
    bias = -jnp.asarray(_SHIFT, dtype=jnp.float32) * inv_scale      # (3,)
    a = jnp.repeat(jnp.tile(inv_scale, n), k).reshape(rows_s, 1)    # (rows_s, 1)
    b = jnp.repeat(jnp.tile(bias, n), k).reshape(rows_s, 1)         # (rows_s, 1)

    tile = _pick_tile(lane_s, rows_s, itemsize)
    grid = (lane_s // tile,)

    cost = pl.CostEstimate(
        flops=2 * rows_s * lane_s,                      # one FMA per element
        transcendentals=0,
        bytes_accessed=2 * rows_s * lane_s * itemsize,  # read + write
    )

    out2 = pl.pallas_call(
        _scaling_kernel,
        out_shape=jax.ShapeDtypeStruct((rows_s, lane_s), dtype),
        grid_spec=pltpu.PrefetchScalarGridSpec(
            num_scalar_prefetch=0,
            grid=grid,
            in_specs=[
                pl.BlockSpec((rows_s, tile), lambda j: (0, j)),
                pl.BlockSpec((rows_s, 1), lambda j: (0, 0)),  # DMA'd once
                pl.BlockSpec((rows_s, 1), lambda j: (0, 0)),  # DMA'd once
            ],
            out_specs=pl.BlockSpec((rows_s, tile), lambda j: (0, j)),
        ),
        compiler_params=pltpu.CompilerParams(
            dimension_semantics=("parallel",),        # v7x: shard steps over 2 TCs
            vmem_limit_bytes=32 * 1024 * 1024,        # lift v5e's 16 MiB default
        ),
        cost_estimate=cost,
    )(x2, a, b)

    out = out2.reshape(rows, hw_pad)
    if hw_pad != hw:
        out = out[:, :hw]
    return out.reshape(n, c, h, w)


if __name__ == "__main__":
    key = jax.random.PRNGKey(0)
    # NCHW input, 3 channels as required by the module.
    x = jax.random.normal(key, (2, 3, 16, 16), dtype=jnp.float32)

    y = scaling_layer(x)
    jax.block_until_ready(y)

    # Reference check (same semantics as the PyTorch forward).
    shift_ref = jnp.asarray(_SHIFT, jnp.float32).reshape(1, 3, 1, 1)
    scale_ref = jnp.asarray(_SCALE, jnp.float32).reshape(1, 3, 1, 1)
    y_ref = (x - shift_ref) / scale_ref
    assert y.shape == x.shape and y.dtype == x.dtype
    assert jnp.allclose(y, y_ref, rtol=1e-5, atol=1e-5)

    # Also exercise a non-128-multiple spatial size (padding path) and the
    # row-split path with a realistic LPIPS-like shape.
    x2 = jax.random.normal(jax.random.PRNGKey(1), (2, 3, 17, 19), jnp.float32)
    y2 = scaling_layer(x2)
    jax.block_until_ready(y2)
    assert jnp.allclose(y2, (x2 - shift_ref) / scale_ref, rtol=1e-5, atol=1e-5)

    x3 = jax.random.normal(jax.random.PRNGKey(2), (2, 3, 224, 224), jnp.float32)
    y3 = scaling_layer(x3)
    jax.block_until_ready(y3)
    assert jnp.allclose(y3, (x3 - shift_ref) / scale_ref, rtol=1e-5, atol=1e-5)

    print("KERNEL_OK")
</pallas_src>

<mosaic_0001>
module attributes {stable_mosaic.version = 11 : i64} {
  func.func @_scaling_kernel(%arg0: i32, %arg1: memref<6x256xf32, #tpu.memory_space<vmem>>, %arg2: memref<6x1xf32, #tpu.memory_space<vmem>>, %arg3: memref<6x1xf32, #tpu.memory_space<vmem>>, %arg4: memref<6x256xf32, #tpu.memory_space<vmem>>) attributes {dimension_semantics = [#tpu.dimension_semantics<parallel>], iteration_bounds = array<i64: 1>, scalar_prefetch = 0 : i64, scratch_operands = 0 : i64, tpu.core_type = #tpu.core_type<tc>, window_params = [{transform_indices = @transform_0, window_bounds = array<i64: 6, 256>}, {pipeline_mode = #tpu.pipeline_mode<synchronous>, transform_indices = @transform_1, window_bounds = array<i64: 6, 1>}, {pipeline_mode = #tpu.pipeline_mode<synchronous>, transform_indices = @transform_2, window_bounds = array<i64: 6, 1>}, {transform_indices = @transform_3, window_bounds = array<i64: 6, 256>}]} {
    %c0 = arith.constant 0 : index
    %c0_0 = arith.constant 0 : index
    %0 = vector.load %arg1[%c0, %c0_0] : memref<6x256xf32, #tpu.memory_space<vmem>>, vector<6x256xf32>
    %c0_1 = arith.constant 0 : index
    %c0_2 = arith.constant 0 : index
    %1 = vector.load %arg2[%c0_1, %c0_2] : memref<6x1xf32, #tpu.memory_space<vmem>>, vector<6x1xf32>
    %c0_3 = arith.constant 0 : index
    %c0_4 = arith.constant 0 : index
    %2 = vector.load %arg3[%c0_3, %c0_4] : memref<6x1xf32, #tpu.memory_space<vmem>>, vector<6x1xf32>
    %3 = vector.broadcast %1 : vector<6x1xf32> to vector<6x256xf32>
    %4 = arith.mulf %0, %3 : vector<6x256xf32>
    %5 = vector.broadcast %2 : vector<6x1xf32> to vector<6x256xf32>
    %6 = arith.addf %4, %5 : vector<6x256xf32>
    %c0_5 = arith.constant 0 : index
    %c0_6 = arith.constant 0 : index
    %7 = vector.load %arg4[%c0_5, %c0_6] : memref<6x256xf32, #tpu.memory_space<vmem>>, vector<6x256xf32>
    tpu.vector_store %arg4[%c0_5, %c0_6], %6 {strides = array<i32>} : memref<6x256xf32, #tpu.memory_space<vmem>>, vector<6x256xf32>,
    return
  }
  func.func @transform_0(%arg0: i32) -> (i32, i32) {
    %c0_i32 = arith.constant 0 : i32
    %c0_i32_0 = arith.constant 0 : i32
    return %c0_i32, %arg0 : i32, i32
  }
  func.func @transform_1(%arg0: i32) -> (i32, i32) {
    %c0_i32 = arith.constant 0 : i32
    %c0_i32_0 = arith.constant 0 : i32
    %c0_i32_1 = arith.constant 0 : i32
    return %c0_i32, %c0_i32_0 : i32, i32
  }
  func.func @transform_2(%arg0: i32) -> (i32, i32) {
    %c0_i32 = arith.constant 0 : i32
    %c0_i32_0 = arith.constant 0 : i32
    %c0_i32_1 = arith.constant 0 : i32
    return %c0_i32, %c0_i32_0 : i32, i32
  }
  func.func @transform_3(%arg0: i32) -> (i32, i32) {
    %c0_i32 = arith.constant 0 : i32
    %c0_i32_0 = arith.constant 0 : i32
    return %c0_i32, %arg0 : i32, i32
  }
}

</mosaic_0001>

<bundles_post_ra>
// kernel: tpu_custom_call.1
= control target key start
LH: loop header
LB: loop body
LE: loop exit
PB: predicated region body
PF: predicated region fallthrough
CT: control target
= control target key end

     0   :  { %v74_v1 = vmov 0   ;;  %s111_s0 = inlined_call_operand.vmem [shape: f32[6,256], index: 0, kind: input, shape index: {}]   ;;  %s112_s1 = inlined_call_operand.vmem [shape: f32[6,1], index: 1, kind: input, shape index: {}]   ;;  %s113_s2 = inlined_call_operand.vmem [shape: f32[6,1], index: 2, kind: input, shape index: {}]   ;;  %s114_s3 = inlined_call_operand.hbm [shape: f32[6,256], index: 3, kind: output, shape index: {}]  }
   0x1   :  { %v17_v0 = vld [vmem:[%s112_s1] sm:$0x3f]  ;;  %51 = vset.pattern.permute.xlu0 %v74_v1 }
   0x2   :  { %8 = vsyncpa [#allocation3], 0  ;;  %21 = vperm.xlu0 %51, %v17_v0   ;;  %v18_v2 = vld [vmem:[%s113_s2] sm:$0x3f]  ;;  %v16_v5 = vld [vmem:[%s111_s0 + $0x8] sm:$0x3f] }
   0x3   :  { %v15_v4 = vld [vmem:[%s111_s0] sm:$0x3f]  ;;  %s75_s20 = smov [#allocation2]  }
   0x4   :  { %s41_s1 = sshll.u32 %s75_s20, 4  ;;  %s42_s1 = int_to_ptr.vmem [resolvable:$true] %s41_s1 }
   0x5   :  { %s52_s2 = scalar_lea.vmem %s42_s1, 256  ;;  %p57_p1 = scmp.lt.s32.totalorder %s42_s1, %s42_s1 }
   0x6   :  { %28 = vperm.xlu0 %51, %v18_v2   ;;  %p53_p0 = scmp.ne.s32.totalorder %s42_s1, %s52_s2  ;;  %p58_p2 = scmp.lt.s32.totalorder %s52_s2, %s52_s2 }
   0x8   :  { %p59_p3 = por %p58_p2, %p57_p1 }
   0xa   :  { %p60_p4 = pnand %p59_p3, %p53_p0 }
  0x7d   :  { %v22_v3 = vpop.permute.xlu0 %21 }
  0x7e   :  { %v24_v6 = vmul.f32 %v22_v3, %v15_v4  ;;  %v25_v7 = vmul.f32 %v22_v3, %v16_v5 }
  0x81   :  { %v29_v8 = vpop.permute.xlu0 %28 }
  0x82   :  { %v31_v9 = vadd.f32 %v29_v8, %v24_v6  ;;  %v32_v10 = vadd.f32 %v29_v8, %v25_v7 }
  0x84   :  { %33 = vst [vmem:[#allocation2] sm:$0x3f] %v31_v9  ;;  %34 = vst [vmem:[#allocation2 + $0x8] sm:$0x3f] %v32_v10 }
  0x85   :  { %63 = shalt.err (!%p60_p4)
}
  0x86   :  { %44 = dma.vmem_to_hbm [thread:$0]  %s42_s1, 256, %s114_s3, [#allocation3]  }
  0x87   :  { %72 = dma.done.wait [#allocation3], 256  }
  0x88   :  { %73 = vsyncadd [#allocation3], 4294967040 }
  0x89   :  { %48 = vsyncpa [#allocation3], 1 }

</bundles_post_ra>
